<compile_context>
chip_gen: v6e
topology: v6e:2x2x1
jax: 0.10.0
libtpu: 0.0.40
codegen_flags: <defaults>
</compile_context>

<pallas_src>
import functools

import jax
import jax.numpy as jnp
from jax.experimental import pallas as pl
from jax.experimental.pallas import tpu as pltpu

LANE = 128


def _round_up(x, m):
    return (x + m - 1) // m * m


def actor_kernel(state_ref, w1_ref, b1_ref, w2_ref, b2_ref, w3_ref, b3_ref,
                 out_ref, *, max_action):
    # state_ref: [TB, S_pad] bf16; weights bf16 [in_pad, out_pad]; biases f32 [1, out_pad]
    x = state_ref[...]

    # l1 + ReLU  (bf16 x bf16 -> f32 accumulate on the MXU)
    h1 = jnp.dot(x, w1_ref[...], preferred_element_type=jnp.float32)
    h1 = jnp.maximum(h1 + b1_ref[...], 0.0)

    # l2 + ReLU
    h2 = jnp.dot(h1.astype(jnp.bfloat16), w2_ref[...],
                 preferred_element_type=jnp.float32)
    h2 = jnp.maximum(h2 + b2_ref[...], 0.0)

    # l3 + tanh, scale by max_action (compile-time constant) -- fused epilogue
    h3 = jnp.dot(h2.astype(jnp.bfloat16), w3_ref[...],
                 preferred_element_type=jnp.float32)
    h3 = h3 + b3_ref[...]
    out_ref[...] = (jnp.tanh(h3) * max_action).astype(out_ref.dtype)


def prepare_actor_params(params):
    """ONE-TIME prep (keep the result across forward calls).

    Zero-pads every weight to lane-aligned [in_pad, out_pad] bf16 and every
    bias to (1, out_pad) f32.  Padding is exact (pad rows/cols contribute 0.0
    to real outputs), so doing it once avoids re-reading/rewriting the weights
    from HBM on every forward call.
    """
    def pad2(a, r, c):
        return jnp.pad(a, ((0, r - a.shape[0]), (0, c - a.shape[1])))

    w1, b1 = params["w1"], params["b1"]
    w2, b2 = params["w2"], params["b2"]
    w3, b3 = params["w3"], params["b3"]
    S_pad = _round_up(w1.shape[0], LANE)
    H1_pad = _round_up(w1.shape[1], LANE)
    H2_pad = _round_up(w2.shape[1], LANE)
    A_pad = _round_up(w3.shape[1], LANE)
    return {
        "w1": pad2(w1, S_pad, H1_pad).astype(jnp.bfloat16),
        "w2": pad2(w2, H1_pad, H2_pad).astype(jnp.bfloat16),
        "w3": pad2(w3, H2_pad, A_pad).astype(jnp.bfloat16),
        "b1": jnp.pad(b1, (0, H1_pad - b1.shape[0])).reshape(1, H1_pad).astype(jnp.float32),
        "b2": jnp.pad(b2, (0, H2_pad - b2.shape[0])).reshape(1, H2_pad).astype(jnp.float32),
        "b3": jnp.pad(b3, (0, A_pad - b3.shape[0])).reshape(1, A_pad).astype(jnp.float32),
    }


def _pick_batch_tile(B):
    """Small B: round to the bf16 sublane granule (16).  Large B: the biggest
    of {1024, 512, 256} that still leaves >= 2 grid tiles (keeps the second
    TensorCore on v7x busy).  All choices are multiples of 128 (v5e MXU) and
    256 (v6e/v7x MXU)."""
    if B <= 256:
        return _round_up(max(B, 1), 16)
    for cand in (1024, 512):
        if B >= 2 * cand:
            return cand
    return 256


@functools.partial(jax.jit, static_argnames=("max_action", "action_dim"))
def actor_forward(state, prep, max_action, action_dim):
    """state: [B, state_dim] f32.  prep: output of prepare_actor_params."""
    B, state_dim = state.shape
    w1, w2, w3 = prep["w1"], prep["w2"], prep["w3"]
    b1, b2, b3 = prep["b1"], prep["b2"], prep["b3"]
    S_pad, H1_pad = w1.shape
    H2_pad = w2.shape[1]
    A_pad = w3.shape[1]

    TB = _pick_batch_tile(B)
    B_pad = _round_up(B, TB)
    num_tiles = B_pad // TB

    # Only the state is padded/cast per call (weights were prepared once).
    state_p = jnp.pad(state, ((0, B_pad - B), (0, S_pad - state_dim))).astype(jnp.bfloat16)

    # Weights/biases: constant block index across the grid -> VMEM-resident,
    # single-buffered (no point double-buffering data that never changes).
    def resident(shape):
        return pl.BlockSpec(shape, lambda i: (0, 0), pipeline_mode=pl.Buffered(1))

    # Explicit VMEM budget: weights (1 buffer) + double-buffered state/out tiles
    # + f32 h1/h2 intermediates, with headroom.  Capped at v7x's 64 MiB physical.
    weight_bytes = (w1.size + w2.size + w3.size) * 2 + (b1.size + b2.size + b3.size) * 4
    stream_bytes = 2 * (TB * S_pad * 2) + 2 * (TB * A_pad * 4)
    scratch_bytes = 2 * TB * (H1_pad + H2_pad) * 4
    vmem_limit = min((weight_bytes + stream_bytes + scratch_bytes) * 2 + (32 << 20),
                     64 << 20)

    # Advisory cost estimate for XLA's scheduler.
    flops = 2 * B_pad * (S_pad * H1_pad + H1_pad * H2_pad + H2_pad * A_pad)
    bytes_accessed = int(state_p.size * 2 + weight_bytes + B_pad * A_pad * 4)
    cost = pl.CostEstimate(flops=flops, transcendentals=B_pad * A_pad,
                           bytes_accessed=bytes_accessed)

    kernel = functools.partial(actor_kernel, max_action=float(max_action))

    out_padded = pl.pallas_call(
        kernel,
        out_shape=jax.ShapeDtypeStruct((B_pad, A_pad), jnp.float32),
        grid=(num_tiles,),
        in_specs=[
            pl.BlockSpec((TB, S_pad), lambda i: (i, 0)),
            resident((S_pad, H1_pad)), resident((1, H1_pad)),
            resident((H1_pad, H2_pad)), resident((1, H2_pad)),
            resident((H2_pad, A_pad)), resident((1, A_pad)),
        ],
        out_specs=pl.BlockSpec((TB, A_pad), lambda i: (i, 0)),
        compiler_params=pltpu.CompilerParams(
            # Batch tiles are independent -> shard across v7x's 2 TensorCores.
            dimension_semantics=("parallel",),
            vmem_limit_bytes=int(vmem_limit),
        ),
        cost_estimate=cost,
    )(state_p, w1, b1, w2, b2, w3, b3)

    return out_padded[:B, :action_dim]


def init_actor_params(key, state_dim, action_dim, actor_hidden):
    """Deterministic init mirroring nn.Linear default (uniform +-1/sqrt(fan_in)).
    Weights stored transposed: [in, out]."""
    h0, h1 = actor_hidden
    keys = jax.random.split(key, 6)

    def linear(kw, kb, fan_in, fan_out):
        bound = 1.0 / jnp.sqrt(fan_in)
        w = jax.random.uniform(kw, (fan_in, fan_out), jnp.float32, -bound, bound)
        b = jax.random.uniform(kb, (fan_out,), jnp.float32, -bound, bound)
        return w, b

    w1, b1 = linear(keys[0], keys[1], state_dim, h0)
    w2, b2 = linear(keys[2], keys[3], h0, h1)
    w3, b3 = linear(keys[4], keys[5], h1, action_dim)
    return {"w1": w1, "b1": b1, "w2": w2, "b2": b2, "w3": w3, "b3": b3}


def actor_reference_f32(state, params, max_action):
    x = jnp.maximum(state @ params["w1"] + params["b1"], 0.0)
    x = jnp.maximum(x @ params["w2"] + params["b2"], 0.0)
    x = jnp.tanh(x @ params["w3"] + params["b3"])
    return x * max_action


def actor_reference_bf16(state, params, max_action):
    """Same numerics path as the kernel (bf16 matmul inputs, f32 accumulate)."""
    w1 = params["w1"].astype(jnp.bfloat16)
    w2 = params["w2"].astype(jnp.bfloat16)
    w3 = params["w3"].astype(jnp.bfloat16)
    x = state.astype(jnp.bfloat16)
    h1 = jnp.maximum(
        jnp.dot(x, w1, preferred_element_type=jnp.float32) + params["b1"], 0.0)
    h2 = jnp.maximum(
        jnp.dot(h1.astype(jnp.bfloat16), w2, preferred_element_type=jnp.float32)
        + params["b2"], 0.0)
    h3 = jnp.dot(h2.astype(jnp.bfloat16), w3,
                 preferred_element_type=jnp.float32) + params["b3"]
    return jnp.tanh(h3) * max_action


if __name__ == "__main__":
    key = jax.random.PRNGKey(0)
    k_params, k_state, k_state_big = jax.random.split(key, 3)

    batch = 2
    state_dim = 16
    action_dim = 8
    actor_hidden = (32, 32)
    max_action = 2.0

    params = init_actor_params(k_params, state_dim, action_dim, actor_hidden)
    prep = prepare_actor_params(params)          # one-time weight prep
    state = jax.random.normal(k_state, (batch, state_dim), jnp.float32)

    out = actor_forward(state, prep, max_action, action_dim)
    out = jax.block_until_ready(out)
    assert out.shape == (batch, action_dim)

    # Exact-path check (same bf16-in / f32-acc numerics as the kernel).
    ref_bf16 = actor_reference_bf16(state, params, max_action)
    assert jnp.allclose(out, ref_bf16, atol=1e-3, rtol=1e-3), \
        "mismatch vs bf16-matched reference"

    # Loose sanity check against the full-f32 PyTorch-equivalent reference.
    ref_f32 = actor_reference_f32(state, params, max_action)
    assert jnp.allclose(out, ref_f32, atol=5e-2, rtol=5e-2), \
        "mismatch vs f32 reference"

    # Also exercise the multi-tile (batched replay-buffer sized) path.
    big_batch = 600
    state_big = jax.random.normal(k_state_big, (big_batch, state_dim), jnp.float32)
    out_big = jax.block_until_ready(
        actor_forward(state_big, prep, max_action, action_dim))
    assert out_big.shape == (big_batch, action_dim)
    ref_big = actor_reference_bf16(state_big, params, max_action)
    assert jnp.allclose(out_big, ref_big, atol=1e-3, rtol=1e-3), \
        "mismatch vs bf16-matched reference (multi-tile path)"

    print("KERNEL_OK")
</pallas_src>

<mosaic_0001>
module attributes {stable_mosaic.version = 11 : i64} {
  func.func @actor_kernel(%arg0: i32, %arg1: memref<16x128xbf16, #tpu.memory_space<vmem>>, %arg2: memref<128x128xbf16, #tpu.memory_space<vmem>>, %arg3: memref<1x128xf32, #tpu.memory_space<vmem>>, %arg4: memref<128x128xbf16, #tpu.memory_space<vmem>>, %arg5: memref<1x128xf32, #tpu.memory_space<vmem>>, %arg6: memref<128x128xbf16, #tpu.memory_space<vmem>>, %arg7: memref<1x128xf32, #tpu.memory_space<vmem>>, %arg8: memref<16x128xf32, #tpu.memory_space<vmem>>) attributes {dimension_semantics = [#tpu.dimension_semantics<parallel>], iteration_bounds = array<i64: 1>, scalar_prefetch = 0 : i64, scratch_operands = 0 : i64, tpu.core_type = #tpu.core_type<tc>, window_params = [{transform_indices = @transform_0, window_bounds = array<i64: 16, 128>}, {pipeline_mode = #tpu.pipeline_mode<synchronous>, transform_indices = @transform_1, window_bounds = array<i64: 128, 128>}, {pipeline_mode = #tpu.pipeline_mode<synchronous>, transform_indices = @transform_2, window_bounds = array<i64: 1, 128>}, {pipeline_mode = #tpu.pipeline_mode<synchronous>, transform_indices = @transform_3, window_bounds = array<i64: 128, 128>}, {pipeline_mode = #tpu.pipeline_mode<synchronous>, transform_indices = @transform_4, window_bounds = array<i64: 1, 128>}, {pipeline_mode = #tpu.pipeline_mode<synchronous>, transform_indices = @transform_5, window_bounds = array<i64: 128, 128>}, {pipeline_mode = #tpu.pipeline_mode<synchronous>, transform_indices = @transform_6, window_bounds = array<i64: 1, 128>}, {transform_indices = @transform_7, window_bounds = array<i64: 16, 128>}]} {
    %c0 = arith.constant 0 : index
    %c0_0 = arith.constant 0 : index
    %0 = vector.load %arg1[%c0, %c0_0] : memref<16x128xbf16, #tpu.memory_space<vmem>>, vector<16x128xbf16>
    %c0_1 = arith.constant 0 : index
    %c0_2 = arith.constant 0 : index
    %1 = vector.load %arg2[%c0_1, %c0_2] : memref<128x128xbf16, #tpu.memory_space<vmem>>, vector<128x128xbf16>
    %cst = arith.constant dense<0.000000e+00> : vector<16x128xf32>
    %2 = tpu.matmul %0, %1, %cst {dimension_numbers = #tpu.dot_dimension_numbers<[1], [0], [0], [1], [0, 0, 1, 1], [], []>} : vector<16x128xbf16>, vector<128x128xbf16>, vector<16x128xf32> -> vector<16x128xf32>
    %c0_3 = arith.constant 0 : index
    %c0_4 = arith.constant 0 : index
    %3 = vector.load %arg3[%c0_3, %c0_4] : memref<1x128xf32, #tpu.memory_space<vmem>>, vector<1x128xf32>
    %4 = vector.broadcast %3 : vector<1x128xf32> to vector<16x128xf32>
    %5 = arith.addf %2, %4 : vector<16x128xf32>
    %cst_5 = arith.constant 0.000000e+00 : f32
    %6 = vector.broadcast %cst_5 : f32 to vector<16x128xf32>
    %7 = arith.maximumf %5, %6 : vector<16x128xf32>
    %8 = arith.truncf %7 : vector<16x128xf32> to vector<16x128xbf16>
    %c0_6 = arith.constant 0 : index
    %c0_7 = arith.constant 0 : index
    %9 = vector.load %arg4[%c0_6, %c0_7] : memref<128x128xbf16, #tpu.memory_space<vmem>>, vector<128x128xbf16>
    %cst_8 = arith.constant dense<0.000000e+00> : vector<16x128xf32>
    %10 = tpu.matmul %8, %9, %cst_8 {dimension_numbers = #tpu.dot_dimension_numbers<[1], [0], [0], [1], [0, 0, 1, 1], [], []>} : vector<16x128xbf16>, vector<128x128xbf16>, vector<16x128xf32> -> vector<16x128xf32>
    %c0_9 = arith.constant 0 : index
    %c0_10 = arith.constant 0 : index
    %11 = vector.load %arg5[%c0_9, %c0_10] : memref<1x128xf32, #tpu.memory_space<vmem>>, vector<1x128xf32>
    %12 = vector.broadcast %11 : vector<1x128xf32> to vector<16x128xf32>
    %13 = arith.addf %10, %12 : vector<16x128xf32>
    %cst_11 = arith.constant 0.000000e+00 : f32
    %14 = vector.broadcast %cst_11 : f32 to vector<16x128xf32>
    %15 = arith.maximumf %13, %14 : vector<16x128xf32>
    %16 = arith.truncf %15 : vector<16x128xf32> to vector<16x128xbf16>
    %c0_12 = arith.constant 0 : index
    %c0_13 = arith.constant 0 : index
    %17 = vector.load %arg6[%c0_12, %c0_13] : memref<128x128xbf16, #tpu.memory_space<vmem>>, vector<128x128xbf16>
    %cst_14 = arith.constant dense<0.000000e+00> : vector<16x128xf32>
    %18 = tpu.matmul %16, %17, %cst_14 {dimension_numbers = #tpu.dot_dimension_numbers<[1], [0], [0], [1], [0, 0, 1, 1], [], []>} : vector<16x128xbf16>, vector<128x128xbf16>, vector<16x128xf32> -> vector<16x128xf32>
    %c0_15 = arith.constant 0 : index
    %c0_16 = arith.constant 0 : index
    %19 = vector.load %arg7[%c0_15, %c0_16] : memref<1x128xf32, #tpu.memory_space<vmem>>, vector<1x128xf32>
    %20 = vector.broadcast %19 : vector<1x128xf32> to vector<16x128xf32>
    %21 = arith.addf %18, %20 : vector<16x128xf32>
    %22 = math.tanh %21 : vector<16x128xf32>
    %cst_17 = arith.constant 2.000000e+00 : f32
    %23 = vector.broadcast %cst_17 : f32 to vector<16x128xf32>
    %24 = arith.mulf %22, %23 : vector<16x128xf32>
    %c0_18 = arith.constant 0 : index
    %c0_19 = arith.constant 0 : index
    %25 = vector.load %arg8[%c0_18, %c0_19] : memref<16x128xf32, #tpu.memory_space<vmem>>, vector<16x128xf32>
    tpu.vector_store %arg8[%c0_18, %c0_19], %24 {strides = array<i32>} : memref<16x128xf32, #tpu.memory_space<vmem>>, vector<16x128xf32>,
    return
  }
  func.func @transform_0(%arg0: i32) -> (i32, i32) {
    %c0_i32 = arith.constant 0 : i32
    %c0_i32_0 = arith.constant 0 : i32
    return %arg0, %c0_i32 : i32, i32
  }
  func.func @transform_1(%arg0: i32) -> (i32, i32) {
    %c0_i32 = arith.constant 0 : i32
    %c0_i32_0 = arith.constant 0 : i32
    %c0_i32_1 = arith.constant 0 : i32
    return %c0_i32, %c0_i32_0 : i32, i32
  }
  func.func @transform_2(%arg0: i32) -> (i32, i32) {
    %c0_i32 = arith.constant 0 : i32
    %c0_i32_0 = arith.constant 0 : i32
    %c0_i32_1 = arith.constant 0 : i32
    return %c0_i32, %c0_i32_0 : i32, i32
  }
  func.func @transform_3(%arg0: i32) -> (i32, i32) {
    %c0_i32 = arith.constant 0 : i32
    %c0_i32_0 = arith.constant 0 : i32
    %c0_i32_1 = arith.constant 0 : i32
    return %c0_i32, %c0_i32_0 : i32, i32
  }
  func.func @transform_4(%arg0: i32) -> (i32, i32) {
    %c0_i32 = arith.constant 0 : i32
    %c0_i32_0 = arith.constant 0 : i32
    %c0_i32_1 = arith.constant 0 : i32
    return %c0_i32, %c0_i32_0 : i32, i32
  }
  func.func @transform_5(%arg0: i32) -> (i32, i32) {
    %c0_i32 = arith.constant 0 : i32
    %c0_i32_0 = arith.constant 0 : i32
    %c0_i32_1 = arith.constant 0 : i32
    return %c0_i32, %c0_i32_0 : i32, i32
  }
  func.func @transform_6(%arg0: i32) -> (i32, i32) {
    %c0_i32 = arith.constant 0 : i32
    %c0_i32_0 = arith.constant 0 : i32
    %c0_i32_1 = arith.constant 0 : i32
    return %c0_i32, %c0_i32_0 : i32, i32
  }
  func.func @transform_7(%arg0: i32) -> (i32, i32) {
    %c0_i32 = arith.constant 0 : i32
    %c0_i32_0 = arith.constant 0 : i32
    return %arg0, %c0_i32 : i32, i32
  }
}

</mosaic_0001>

<bundles_post_ra>
// kernel: actor_forward.1
= control target key start
LH: loop header
LB: loop body
LE: loop exit
PB: predicated region body
PF: predicated region fallthrough
CT: control target
= control target key end

     0   :  { %12 = vsyncpa [#allocation3], 0  ;;  %s749_s0 = inlined_call_operand.vmem [shape: bf16[16,128], index: 0, kind: input, shape index: {}]   ;;  %s750_s1 = inlined_call_operand.hbm [shape: bf16[128,128], index: 1, kind: input, shape index: {}]   ;;  %s751_s2 = inlined_call_operand.vmem [shape: f32[1,128], index: 2, kind: input, shape index: {}]   ;;  %s752_s3 = inlined_call_operand.hbm [shape: bf16[128,128], index: 3, kind: input, shape index: {}]   ;;  %s753_s4 = inlined_call_operand.vmem [shape: f32[1,128], index: 4, kind: input, shape index: {}]   ;;  %s754_s5 = inlined_call_operand.hbm [shape: bf16[128,128], index: 5, kind: input, shape index: {}]   ;;  %s755_s6 = inlined_call_operand.vmem [shape: f32[1,128], index: 6, kind: input, shape index: {}]   ;;  %s756_s7 = inlined_call_operand.vmem [shape: f32[16,128], index: 7, kind: output, shape index: {}]  }
   0x1   :  { %13 = vsyncpa [#allocation5], 0  ;;  %s645_s24 = smov [#allocation4]   ;;  %s646_s26 = smov [#allocation2]  }
   0x2   :  { %s35_s25 = sshll.u32 %s645_s24, 4  ;;  %s21_s27 = sshll.u32 %s646_s26, 4  ;;  %s36_s25 = int_to_ptr.vmem [resolvable:$true] %s35_s25  ;;  %s22_s27 = int_to_ptr.vmem [resolvable:$true] %s21_s27 }
   0x3   :  { %s589_s28 = scalar_lea.vmem %s36_s25, 1024  ;;  %p594_p1 = scmp.lt.s32.totalorder %s36_s25, %s36_s25 }
   0x4   :  { %p590_p0 = scmp.ne.s32.totalorder %s36_s25, %s589_s28  ;;  %p595_p2 = scmp.lt.s32.totalorder %s589_s28, %s589_s28 }
   0x6   :  { %p596_p3 = por %p595_p2, %p594_p1 }
   0x8   :  { %p597_p4 = pnand %p596_p3, %p590_p0 }
   0xa   :  { %600 = shalt.err (!%p597_p4)
}
   0xb   :  { %s647_s29 = smov 64   ;;  %s648_s30 = smov 4  }
   0xc   :  { %41 = dma.hbm_to_vmem [thread:$0]  %s752_s3, 1024, %s36_s25, [#allocation5], %s647_s29, %s647_s29, %s648_s30  }
   0xd   :  { %s609_s10 = scalar_lea.vmem %s22_s27, 1024  ;;  %p614_p6 = scmp.lt.s32.totalorder %s22_s27, %s22_s27 }
   0xe   :  { %p610_p5 = scmp.ne.s32.totalorder %s22_s27, %s609_s10  ;;  %p615_p7 = scmp.lt.s32.totalorder %s609_s10, %s609_s10 }
  0x10   :  { %p616_p8 = por %p615_p7, %p614_p6 }
  0x12   :  { %p617_p9 = pnand %p616_p8, %p610_p5 }
  0x14   :  { %620 = shalt.err (!%p617_p9)
}
  0x15   :  { %27 = dma.hbm_to_vmem [thread:$0]  %s750_s1, 1024, %s22_s27, [#allocation3], %s647_s29, %s647_s29, %s648_s30  }
  0x16   :  { %s649_s13 = smov [#allocation6]  }
  0x17   :  { %s49_s14 = sshll.u32 %s649_s13, 4  ;;  %s50_s14 = int_to_ptr.vmem [resolvable:$true] %s49_s14 }
  0x18   :  { %s629_s15 = scalar_lea.vmem %s50_s14, 1024  ;;  %p634_p11 = scmp.lt.s32.totalorder %s50_s14, %s50_s14 }
  0x19   :  { %p630_p10 = scmp.ne.s32.totalorder %s50_s14, %s629_s15  ;;  %p635_p12 = scmp.lt.s32.totalorder %s629_s15, %s629_s15 }
  0x1b   :  { %p636_p13 = por %p635_p12, %p634_p11 }
  0x1d   :  { %p637_p0 = pnand %p636_p13, %p630_p10 }
  0x1f   :  { %640 = shalt.err (!%p637_p0)
}
  0x20   :  { %55 = dma.hbm_to_vmem [thread:$0]  %s754_s5, 1024, %s50_s14, [#allocation5], %s647_s29, %s647_s29, %s648_s30  }
  0x21   :  { %641 = dma.done.wait [#allocation3], 1024  }
  0x22   :  { %642 = vsyncadd [#allocation3], 4294966272 }
  0x23   :  { %643 = dma.done.wait [#allocation5], 2048  }
  0x24   :  { %644 = vsyncadd [#allocation5], 4294965248  ;;  %v650_v0 = vmov 0.0   ;;  %vm651_vm0 = vmmov 0   ;;  %v552_v1 = vld [vmem:[#allocation2 + $0x38] sm:$0xff]   ;;  %v553_v2 = vld [vmem:[#allocation2 + $0x30] sm:$0xff]  }
  0x25   :  { %485 = vmatprep.subr.bf16.mxu0 %v650_v0  ;;  %501 = vmatprep.mubr.msk.bf16.mxu0 %vm651_vm0, %v650_v0  ;;  %v554_v3 = vld [vmem:[#allocation2 + $0x28] sm:$0xff]   ;;  %v561_v4 = vld [vmem:[#allocation4 + $0x38] sm:$0xff]   ;;  %v555_v5 = vld [vmem:[#allocation2 + $0x20] sm:$0xff]  }
  0x26   :  { %505 = vmatprep.subr.bf16.mxu1 %v650_v0  ;;  %521 = vmatprep.mubr.msk.bf16.mxu1 %vm651_vm0, %v650_v0  ;;  %v562_v6 = vld [vmem:[#allocation4 + $0x30] sm:$0xff]   ;;  %v556_v7 = vld [vmem:[#allocation2 + $0x18] sm:$0xff]   ;;  %v563_v8 = vld [vmem:[#allocation4 + $0x28] sm:$0xff]  }
  0x27   :  { %486 = vmatpush3.bf16.msra.mxu0 %v552_v1  ;;  %506 = vmatpush3.bf16.msra.mxu1 %v561_v4  ;;  %v557_v9 = vld [vmem:[#allocation2 + $0x10] sm:$0xff]   ;;  %v564_v10 = vld [vmem:[#allocation4 + $0x20] sm:$0xff]   ;;  %v558_v11 = vld [vmem:[#allocation2 + $0x8] sm:$0xff]  }
  0x28   :  { %487 = vmatprep.subr.bf16.mxu0 %v650_v0  ;;  %507 = vmatprep.subr.bf16.mxu1 %v650_v0  ;;  %v565_v12 = vld [vmem:[#allocation4 + $0x18] sm:$0xff]   ;;  %v559_v13 = vld [vmem:[#allocation2] sm:$0xff]   ;;  %v566_v15 = vld [vmem:[#allocation4 + $0x10] sm:$0xff]  }
  0x29   :  { %v560_v14 = vld [vmem:[%s749_s0] sm:$0xff]   ;;  %v567_v16 = vld [vmem:[#allocation4 + $0x8] sm:$0xff]   ;;  %v569_v18 = vld [vmem:[#allocation6 + $0x38] sm:$0xff]  }
  0x2a   :  { %v568_v17 = vld [vmem:[#allocation4] sm:$0xff]   ;;  %v570_v19 = vld [vmem:[#allocation6 + $0x30] sm:$0xff]   ;;  %v571_v20 = vld [vmem:[#allocation6 + $0x28] sm:$0xff]  }
  0x2b   :  { %488 = vmatpush3.bf16.msra.mxu0 %v553_v2  ;;  %508 = vmatpush3.bf16.msra.mxu1 %v562_v6  ;;  %v572_v21 = vld [vmem:[#allocation6 + $0x20] sm:$0xff]   ;;  %v573_v22 = vld [vmem:[#allocation6 + $0x18] sm:$0xff]   ;;  %v574_v33 = vld [vmem:[#allocation6 + $0x10] sm:$0xff]  }
  0x2c   :  { %489 = vmatprep.subr.bf16.mxu0 %v650_v0  ;;  %509 = vmatprep.subr.bf16.mxu1 %v650_v0  ;;  %v430_v23 = vld [vmem:[%s751_s2] ss:$0 sm:$0xff]  ;;  %v575_v34 = vld [vmem:[#allocation6 + $0x8] sm:$0xff]  }
  0x2d   :  { %v576_v35 = vld [vmem:[#allocation6] sm:$0xff]  }
  0x2e   :  { %v440_v36 = vld [vmem:[%s753_s4] ss:$0 sm:$0xff] }
  0x2f   :  { %490 = vmatpush3.bf16.msra.mxu0 %v554_v3  ;;  %510 = vmatpush3.bf16.msra.mxu1 %v563_v8  ;;  %v449_v46 = vld [vmem:[%s755_s6] ss:$0 sm:$0xff] }
  0x30   :  { %491 = vmatprep.subr.bf16.mxu0 %v650_v0  ;;  %511 = vmatprep.subr.bf16.mxu1 %v650_v0 }
  0x33   :  { %492 = vmatpush3.bf16.msra.mxu0 %v555_v5  ;;  %512 = vmatpush3.bf16.msra.mxu1 %v564_v10 }
  0x34   :  { %493 = vmatprep.subr.bf16.mxu0 %v650_v0  ;;  %513 = vmatprep.subr.bf16.mxu1 %v650_v0 }
  0x37   :  { %494 = vmatpush3.bf16.msra.mxu0 %v556_v7  ;;  %514 = vmatpush3.bf16.msra.mxu1 %v565_v12 }
  0x38   :  { %495 = vmatprep.subr.bf16.mxu0 %v650_v0  ;;  %515 = vmatprep.subr.bf16.mxu1 %v650_v0 }
  0x3b   :  { %496 = vmatpush3.bf16.msra.mxu0 %v557_v9  ;;  %516 = vmatpush3.bf16.msra.mxu1 %v566_v15 }
  0x3c   :  { %497 = vmatprep.subr.bf16.mxu0 %v650_v0  ;;  %517 = vmatprep.subr.bf16.mxu1 %v650_v0 }
  0x3f   :  { %498 = vmatpush3.bf16.msra.mxu0 %v558_v11  ;;  %518 = vmatpush3.bf16.msra.mxu1 %v567_v16 }
  0x40   :  { %499 = vmatprep.subr.bf16.mxu0 %v650_v0  ;;  %519 = vmatprep.subr.bf16.mxu1 %v650_v0 }
  0x43   :  { %500 = vmatpush3.bf16.msra.mxu0 %v559_v13  ;;  %520 = vmatpush3.bf16.msra.mxu1 %v568_v17 }
  0x44   :  { %525 = vmatprep.subr.bf16.mxu0 %v650_v0 }
  0x46   :  { %502 = vmatmul.mubr.bf16.vlgmr.msra.gmra.mxu0 %v560_v14 }
  0x47   :  { %541 = vmatprep.mubr.msk.bf16.mxu0 %vm651_vm0, %v650_v0  ;;  %526 = vmatpush3.bf16.msra.mxu0 %v569_v18 }
  0x48   :  { %527 = vmatprep.subr.bf16.mxu0 %v650_v0 }
  0x4b   :  { %528 = vmatpush3.bf16.msra.mxu0 %v570_v19 }
  0x4c   :  { %529 = vmatprep.subr.bf16.mxu0 %v650_v0 }
  0x4f   :  { %530 = vmatpush3.bf16.msra.mxu0 %v571_v20 }
  0x50   :  { %531 = vmatprep.subr.bf16.mxu0 %v650_v0 }
  0x53   :  { %532 = vmatpush3.bf16.msra.mxu0 %v572_v21 }
  0x54   :  { %533 = vmatprep.subr.bf16.mxu0 %v650_v0 }
  0x57   :  { %534 = vmatpush3.bf16.msra.mxu0 %v573_v22 }
  0x58   :  { %535 = vmatprep.subr.bf16.mxu0 %v650_v0 }
  0x5b   :  { %536 = vmatpush3.bf16.msra.mxu0 %v574_v33 }
  0x5c   :  { %537 = vmatprep.subr.bf16.mxu0 %v650_v0 }
  0x5f   :  { %538 = vmatpush3.bf16.msra.mxu0 %v575_v34 }
  0x60   :  { %539 = vmatprep.subr.bf16.mxu0 %v650_v0 }
  0x63   :  { %540 = vmatpush3.bf16.msra.mxu0 %v576_v35 }
 0x106   :  { %v181_v24 = vpop.f32.mrf.mxu0 }
 0x107   :  { %v182_v26 = vadd.f32 %v430_v23, %v181_v24 }
 0x108   :  { %v503_v25 = vpop.f32.mrf.mxu0 }
 0x109   :  { %v188_v30 = vmax.f32 %v182_v26, 0.0 }
 0x10a   :  { %v184_v27 = vpop.f32.mrf.mxu0 }
 0x10b   :  { %v185_v28 = vadd.f32 %v430_v23, %v184_v27 }
 0x10c   :  { %v504_v29 = vpop.f32.mrf.mxu0 }
 0x10d   :  { %v189_v31 = vmax.f32 %v185_v28, 0.0 }
 0x10f   :  { %v190_v32 = vpack.c.bf16 %v189_v31, %v188_v30 }
 0x111   :  { %522 = vmatmul.mubr.bf16.vlgmr.msra.gmra.mxu1 %v190_v32 }
 0x1d1   :  { %v296_v37 = vpop.f32.mrf.mxu1 }
 0x1d2   :  { %v297_v39 = vadd.f32 %v440_v36, %v296_v37 }
 0x1d3   :  { %v523_v38 = vpop.f32.mrf.mxu1 }
 0x1d4   :  { %v303_v43 = vmax.f32 %v297_v39, 0.0 }
 0x1d5   :  { %v299_v40 = vpop.f32.mrf.mxu1 }
 0x1d6   :  { %v300_v41 = vadd.f32 %v440_v36, %v299_v40 }
 0x1d7   :  { %v524_v42 = vpop.f32.mrf.mxu1 }
 0x1d8   :  { %v304_v44 = vmax.f32 %v300_v41, 0.0 }
 0x1da   :  { %v305_v45 = vpack.c.bf16 %v304_v44, %v303_v43 }
 0x1dc   :  { %542 = vmatmul.mubr.bf16.vlgmr.msra.gmra.mxu0 %v305_v45 }
 0x29c   :  { %v411_v47 = vpop.f32.mrf.mxu0 }
 0x29d   :  { %v412_v48 = vadd.f32 %v449_v46, %v411_v47 }
 0x29e   :  { %v543_v49 = vpop.f32.mrf.mxu0 }
 0x29f   :  { %577 = vtanh.f32 %v412_v48 }
 0x2a0   :  { %v414_v50 = vpop.f32.mrf.mxu0 }
 0x2a1   :  { %v415_v51 = vadd.f32 %v449_v46, %v414_v50 }
 0x2a2   :  { %v544_v52 = vpop.f32.mrf.mxu0 }
 0x2a3   :  { %579 = vtanh.f32 %v415_v51 }
 0x2ac   :  { %v578_v53 = vpop.eup %577 }
 0x2ad   :  { %v420_v54 = vmul.f32 2.0, %v578_v53 }
 0x2af   :  { %422 = vst [vmem:[%s756_s7] sm:$0xff] %v420_v54 }
 0x2b0   :  { %v580_v55 = vpop.eup %579 }
 0x2b1   :  { %v421_v56 = vmul.f32 2.0, %v580_v55 }
 0x2b3   :  { %423 = vst [vmem:[%s756_s7 + $0x8] sm:$0xff] %v421_v56 }
 0x2b4   :  { %428 = vsyncpa [#allocation3], 1 }
 0x2b5   :  { %429 = vsyncpa [#allocation5], 1 }

</bundles_post_ra>
